<compile_context>
chip_gen: v6e
topology: v6e:2x2x1
jax: 0.10.0
libtpu: 0.0.40
codegen_flags: <defaults>
</compile_context>

<pallas_src>
import functools

import jax
import jax.numpy as jnp
from jax.experimental import pallas as pl
from jax.experimental.pallas import tpu as pltpu


def _round_up(x, m):
    return (x + m - 1) // m * m


@functools.lru_cache(maxsize=1)
def _vmem_cap_bytes():
    """Generation-aware scoped-VMEM cap: ~3/4 of physical per-core VMEM
    (96 MiB of v5e/v6e's 128 MiB, 48 MiB of v7x's 64 MiB), leaving headroom
    for compiler-internal scratch."""
    try:
        phys = int(getattr(pltpu.get_tpu_info(), "vmem_capacity_bytes"))
    except Exception:                       # conservative default if query fails
        phys = 64 << 20
    return (phys * 3) // 4


@functools.lru_cache(maxsize=1)
def _buffered_pipeline_supported():
    """One-time feature probe for BlockSpec(pipeline_mode=pl.Buffered(k)).
    Real kernel errors on the main path are NOT swallowed by this probe."""
    if not hasattr(pl, "Buffered"):
        return False

    def _probe(x_ref, o_ref):
        o_ref[...] = x_ref[...] + 1.0

    try:
        f = pl.pallas_call(
            _probe,
            out_shape=jax.ShapeDtypeStruct((8, 128), jnp.float32),
            grid=(1,),
            in_specs=[pl.BlockSpec((8, 128), lambda i: (0, 0),
                                   pipeline_mode=pl.Buffered(1))],
            out_specs=pl.BlockSpec((8, 128), lambda i: (0, 0)),
        )
        jax.block_until_ready(f(jnp.zeros((8, 128), jnp.float32)))
        return True
    except Exception:                       # probe only, runs once per process
        return False


def _predictor_kernel(x_ref, w1_ref, b1_ref, w2_ref, b2_ref, w3_ref, b3_ref,
                      o_ref, *, compute_dtype, precision):
    """Fused 3-layer MLP.  Matmul operands are `compute_dtype` (bf16 by
    default -> MXU peak); accumulation, bias-add and ReLU stay in f32."""
    x = x_ref[...].astype(compute_dtype)            # cast the tile in VMEM
    # Layer 1: Linear + ReLU
    h1 = jnp.dot(x, w1_ref[...], preferred_element_type=jnp.float32,
                 precision=precision)
    h1 = jnp.maximum(h1 + b1_ref[...], 0.0)
    # Layer 2: Linear + ReLU
    h2 = jnp.dot(h1.astype(compute_dtype), w2_ref[...],
                 preferred_element_type=jnp.float32, precision=precision)
    h2 = jnp.maximum(h2 + b2_ref[...], 0.0)
    # Output head: Linear (no activation). Small-P store stays masked on
    # purpose: padding to 128 lanes would multiply writeback bytes by 128/P.
    out = jnp.dot(h2.astype(compute_dtype), w3_ref[...],
                  preferred_element_type=jnp.float32, precision=precision)
    o_ref[...] = (out + b3_ref[...]).astype(o_ref.dtype)


@functools.partial(
    jax.jit,
    static_argnames=("block_b", "compute_dtype", "precision",
                     "buffered_ok", "vmem_cap"))
def _predictor_forward_impl(x, w1, b1, w2, b2, w3, b3, *, block_b,
                            compute_dtype, precision, buffered_ok, vmem_cap):
    B, F = x.shape
    H = w1.shape[1]
    P = w3.shape[1]
    out_dtype = x.dtype
    compute_dtype = jnp.dtype(compute_dtype)

    # Cast weights once in the wrapper (halves resident-weight VMEM and weight
    # DMA in bf16).  x is deliberately NOT cast here: that would add a full
    # extra HBM pass over a single-use activation.
    w1 = w1.astype(compute_dtype)
    w2 = w2.astype(compute_dtype)
    w3 = w3.astype(compute_dtype)
    b1 = b1.astype(jnp.float32)
    b2 = b2.astype(jnp.float32)
    b3 = b3.astype(jnp.float32)

    cmp_item = compute_dtype.itemsize
    x_item = jnp.dtype(x.dtype).itemsize
    out_item = jnp.dtype(out_dtype).itemsize

    weight_buf = 1 if buffered_ok else 2
    weight_bytes = weight_buf * ((F * H + H * H + H * P) * cmp_item
                                 + (2 * H + P) * 4)

    # Weights that cannot stay resident in one TensorCore's VMEM: use XLA
    # rather than spilling / failing (matters on v7x's 64 MiB).
    # TODO(synk): add a K-tiled Pallas path (grid over F/H with an f32 VMEM
    # accumulator and pl.when init/finalize) for weight sets larger than VMEM.
    if weight_bytes + (16 << 20) > vmem_cap:
        h = jnp.maximum(jnp.dot(x.astype(compute_dtype), w1,
                                preferred_element_type=jnp.float32) + b1, 0.0)
        h = jnp.maximum(jnp.dot(h.astype(compute_dtype), w2,
                                preferred_element_type=jnp.float32) + b2, 0.0)
        out = jnp.dot(h.astype(compute_dtype), w3,
                      preferred_element_type=jnp.float32) + b3
        return out.astype(out_dtype)

    # Per-batch-row VMEM cost inside the kernel (worst case: 3 x buffers).
    per_row = (3 * F * x_item                    # pipelined x tiles
               + F * cmp_item                    # in-kernel cast copy of x
               + 2 * H * (4 + cmp_item)          # h1/h2 f32 + cast copies
               + P * 4 + 2 * P * out_item)       # f32 result + 2x out tile

    if block_b is not None:
        bb = max(1, int(block_b))
        if bb < B:
            bb = min(B, max(8, _round_up(bb, 8)))    # sublane-aligned tiles
        if bb >= B:
            bb = B                                   # full-dim block
    else:
        # Target ~2 MiB of x DMA per grid step (amortizes the ~0.35us fixed
        # per-step overhead), bounded by the VMEM left after the weights.
        avail = vmem_cap - weight_bytes - (8 << 20)
        by_vmem = max(8, avail // max(1, per_row)) if avail > 0 else 8
        target = max(8, (2 << 20) // max(1, F * x_item))
        bb = int(min(target, by_vmem))
        if B >= 128:
            # >=2 grid steps so the "parallel" batch axis shards across both
            # TensorCores on v7x (measured no-op on v5e/v6e).
            bb = min(bb, _round_up(-(-B // 2), 8))
        if bb >= B:
            bb = B
        else:
            bb = max(8, (bb // 8) * 8)

    steps = -(-B // bb)                # ceil; last block may be partial
    grid = (steps,)
    x_buffers = 3 if steps >= 3 else 2

    # Explicit scoped-VMEM budget: what we actually use + fixed headroom,
    # clamped to the per-generation cap.
    needed = (weight_bytes
              + x_buffers * bb * F * x_item
              + 2 * bb * P * out_item
              + bb * (F * cmp_item + 2 * H * (4 + cmp_item) + P * 4))
    vmem_limit = int(min(max(needed + (16 << 20), 32 << 20), vmem_cap))

    if buffered_ok:
        resident = dict(pipeline_mode=pl.Buffered(1))   # single weight copy
        x_mode = dict(pipeline_mode=pl.Buffered(x_buffers))
    else:
        resident = {}
        x_mode = {}

    return pl.pallas_call(
        functools.partial(_predictor_kernel, compute_dtype=compute_dtype,
                          precision=precision),
        out_shape=jax.ShapeDtypeStruct((B, P), out_dtype),
        grid_spec=pltpu.PrefetchScalarGridSpec(
            num_scalar_prefetch=0,
            grid=grid,
            in_specs=[
                # batch tile of x (pipelined across grid steps; boundary
                # block is handled/masked by Pallas -- no wrapper jnp.pad)
                pl.BlockSpec((bb, F), lambda i: (i, 0), **x_mode),
                # weights / biases: whole arrays, resident across the grid
                pl.BlockSpec((F, H), lambda i: (0, 0), **resident),
                pl.BlockSpec((1, H), lambda i: (0, 0), **resident),
                pl.BlockSpec((H, H), lambda i: (0, 0), **resident),
                pl.BlockSpec((1, H), lambda i: (0, 0), **resident),
                pl.BlockSpec((H, P), lambda i: (0, 0), **resident),
                pl.BlockSpec((1, P), lambda i: (0, 0), **resident),
            ],
            out_specs=pl.BlockSpec((bb, P), lambda i: (i, 0)),
        ),
        compiler_params=pltpu.CompilerParams(
            dimension_semantics=("parallel",),
            vmem_limit_bytes=vmem_limit),
    )(x, w1, b1, w2, b2, w3, b3)


def predictor_forward(x, w1, b1, w2, b2, w3, b3, *, block_b=None,
                      compute_dtype=jnp.bfloat16, precision=None):
    """x: [B, dim_feature] -> [B, num_property]  (== PyTorch Predictor).

    compute_dtype defaults to bfloat16 MXU operands with f32 accumulation,
    bias-add and ReLU; pass jnp.float32 for f32 operands (and optionally
    precision=jax.lax.Precision.HIGHEST for true-f32 matmuls)."""
    return _predictor_forward_impl(
        x, w1, b1, w2, b2, w3, b3,
        block_b=None if block_b is None else int(block_b),
        compute_dtype=jnp.dtype(compute_dtype).name,
        precision=precision,
        buffered_ok=_buffered_pipeline_supported(),
        vmem_cap=int(_vmem_cap_bytes()))


def init_predictor_params(key, dim_feature, dim_hidden, num_property,
                          dtype=jnp.float32):
    """Deterministic init mimicking PyTorch nn.Linear default
    (uniform(-1/sqrt(fan_in), 1/sqrt(fan_in)))."""
    keys = jax.random.split(key, 6)

    def linear(kw, kb, fan_in, fan_out):
        bound = 1.0 / jnp.sqrt(jnp.asarray(fan_in, dtype=jnp.float32))
        w = jax.random.uniform(kw, (fan_in, fan_out), dtype, -bound, bound)
        b = jax.random.uniform(kb, (1, fan_out), dtype, -bound, bound)
        return w, b

    w1, b1 = linear(keys[0], keys[1], dim_feature, dim_hidden)
    w2, b2 = linear(keys[2], keys[3], dim_hidden, dim_hidden)
    w3, b3 = linear(keys[4], keys[5], dim_hidden, num_property)
    return w1, b1, w2, b2, w3, b3


def predictor_reference(x, w1, b1, w2, b2, w3, b3):
    h = jnp.maximum(x @ w1 + b1, 0.0)
    h = jnp.maximum(h @ w2 + b2, 0.0)
    return h @ w3 + b3


if __name__ == "__main__":
    # Small shapes consistent with the module's forward: graph-level
    # embedding x of shape [batch, dim_feature].
    batch = 8
    dim_feature = 32
    dim_hidden = 32
    num_property = 4

    key = jax.random.PRNGKey(0)
    key_x, key_p = jax.random.split(key)

    x = jax.random.normal(key_x, (batch, dim_feature), dtype=jnp.float32)
    params = init_predictor_params(key_p, dim_feature, dim_hidden,
                                   num_property)
    ref = predictor_reference(x, *params)

    # Default path: bf16 MXU operands, f32 accumulation (looser tolerance).
    out = jax.block_until_ready(predictor_forward(x, *params))
    assert out.shape == (batch, num_property)
    assert jnp.allclose(out, ref, atol=5e-2, rtol=5e-2), "bf16 mismatch"

    # Explicit f32-operand path (matches the XLA reference tightly).
    out_f32 = jax.block_until_ready(
        predictor_forward(x, *params, compute_dtype=jnp.float32))
    assert out_f32.shape == (batch, num_property)
    assert jnp.allclose(out_f32, ref, atol=1e-5, rtol=1e-5), "f32 mismatch"

    # Ragged batch + explicit tiling: exercises the masked boundary block
    # (no wrapper jnp.pad) and a multi-step pipelined grid.
    batch2 = 300
    x2 = jax.random.normal(jax.random.PRNGKey(1), (batch2, dim_feature),
                           dtype=jnp.float32)
    ref2 = predictor_reference(x2, *params)
    out2 = jax.block_until_ready(
        predictor_forward(x2, *params, block_b=64, compute_dtype=jnp.float32))
    assert out2.shape == (batch2, num_property)
    assert jnp.allclose(out2, ref2, atol=1e-5, rtol=1e-5), "tiled mismatch"

    # Larger batch with the automatic block_b heuristic: >=2 grid steps so the
    # batch axis can shard across both TensorCores on v7x.
    batch3 = 1024
    x3 = jax.random.normal(jax.random.PRNGKey(2), (batch3, dim_feature),
                           dtype=jnp.float32)
    ref3 = predictor_reference(x3, *params)
    out3 = jax.block_until_ready(predictor_forward(x3, *params))
    assert out3.shape == (batch3, num_property)
    assert jnp.allclose(out3, ref3, atol=5e-2, rtol=5e-2), "auto-tile mismatch"

    print("KERNEL_OK")
</pallas_src>

<mosaic_0001>
module attributes {stable_mosaic.version = 11 : i64} {
  func.func @_probe(%arg0: i32, %arg1: memref<8x128xf32, #tpu.memory_space<vmem>>, %arg2: memref<8x128xf32, #tpu.memory_space<vmem>>) attributes {dimension_semantics = [#tpu.dimension_semantics<arbitrary>], iteration_bounds = array<i64: 1>, scalar_prefetch = 0 : i64, scratch_operands = 0 : i64, tpu.core_type = #tpu.core_type<tc>, window_params = [{pipeline_mode = #tpu.pipeline_mode<synchronous>, transform_indices = @transform_0, window_bounds = array<i64: 8, 128>}, {pipeline_mode = #tpu.pipeline_mode<synchronous>, transform_indices = @transform_1, window_bounds = array<i64: 8, 128>}]} {
    %c0 = arith.constant 0 : index
    %c0_0 = arith.constant 0 : index
    %0 = vector.load %arg1[%c0, %c0_0] : memref<8x128xf32, #tpu.memory_space<vmem>>, vector<8x128xf32>
    %cst = arith.constant 1.000000e+00 : f32
    %1 = vector.broadcast %cst : f32 to vector<8x128xf32>
    %2 = arith.addf %0, %1 : vector<8x128xf32>
    %c0_1 = arith.constant 0 : index
    %c0_2 = arith.constant 0 : index
    %3 = vector.load %arg2[%c0_1, %c0_2] : memref<8x128xf32, #tpu.memory_space<vmem>>, vector<8x128xf32>
    tpu.vector_store %arg2[%c0_1, %c0_2], %2 {strides = array<i32>} : memref<8x128xf32, #tpu.memory_space<vmem>>, vector<8x128xf32>,
    return
  }
  func.func @transform_0(%arg0: i32) -> (i32, i32) {
    %c0_i32 = arith.constant 0 : i32
    %c0_i32_0 = arith.constant 0 : i32
    %c0_i32_1 = arith.constant 0 : i32
    return %c0_i32, %c0_i32_0 : i32, i32
  }
  func.func @transform_1(%arg0: i32) -> (i32, i32) {
    %c0_i32 = arith.constant 0 : i32
    %c0_i32_0 = arith.constant 0 : i32
    %c0_i32_1 = arith.constant 0 : i32
    return %c0_i32, %c0_i32_0 : i32, i32
  }
}

module attributes {stable_mosaic.version = 11 : i64} {
  func.func @_predictor_kernel(%arg0: i32, %arg1: memref<8x32xf32, #tpu.memory_space<vmem>>, %arg2: memref<32x32xbf16, #tpu.memory_space<vmem>>, %arg3: memref<1x32xf32, #tpu.memory_space<vmem>>, %arg4: memref<32x32xbf16, #tpu.memory_space<vmem>>, %arg5: memref<1x32xf32, #tpu.memory_space<vmem>>, %arg6: memref<32x4xbf16, #tpu.memory_space<vmem>>, %arg7: memref<1x4xf32, #tpu.memory_space<vmem>>, %arg8: memref<8x4xf32, #tpu.memory_space<vmem>>) attributes {dimension_semantics = [#tpu.dimension_semantics<parallel>], iteration_bounds = array<i64: 1>, scalar_prefetch = 0 : i64, scratch_operands = 0 : i64, tpu.core_type = #tpu.core_type<tc>, window_params = [{transform_indices = @transform_0, window_bounds = array<i64: 8, 32>}, {pipeline_mode = #tpu.pipeline_mode<synchronous>, transform_indices = @transform_1, window_bounds = array<i64: 32, 32>}, {pipeline_mode = #tpu.pipeline_mode<synchronous>, transform_indices = @transform_2, window_bounds = array<i64: 1, 32>}, {pipeline_mode = #tpu.pipeline_mode<synchronous>, transform_indices = @transform_3, window_bounds = array<i64: 32, 32>}, {pipeline_mode = #tpu.pipeline_mode<synchronous>, transform_indices = @transform_4, window_bounds = array<i64: 1, 32>}, {pipeline_mode = #tpu.pipeline_mode<synchronous>, transform_indices = @transform_5, window_bounds = array<i64: 32, 4>}, {pipeline_mode = #tpu.pipeline_mode<synchronous>, transform_indices = @transform_6, window_bounds = array<i64: 1, 4>}, {transform_indices = @transform_7, window_bounds = array<i64: 8, 4>}]} {
    %c0 = arith.constant 0 : index
    %c0_0 = arith.constant 0 : index
    %0 = vector.load %arg1[%c0, %c0_0] : memref<8x32xf32, #tpu.memory_space<vmem>>, vector<8x32xf32>
    %1 = arith.truncf %0 : vector<8x32xf32> to vector<8x32xbf16>
    %c0_1 = arith.constant 0 : index
    %c0_2 = arith.constant 0 : index
    %2 = vector.load %arg2[%c0_1, %c0_2] : memref<32x32xbf16, #tpu.memory_space<vmem>>, vector<32x32xbf16>
    %cst = arith.constant dense<0.000000e+00> : vector<8x32xf32>
    %3 = tpu.matmul %1, %2, %cst {dimension_numbers = #tpu.dot_dimension_numbers<[1], [0], [0], [1], [0, 0, 1, 1], [], []>} : vector<8x32xbf16>, vector<32x32xbf16>, vector<8x32xf32> -> vector<8x32xf32>
    %c0_3 = arith.constant 0 : index
    %c0_4 = arith.constant 0 : index
    %4 = vector.load %arg3[%c0_3, %c0_4] : memref<1x32xf32, #tpu.memory_space<vmem>>, vector<1x32xf32>
    %5 = vector.broadcast %4 : vector<1x32xf32> to vector<8x32xf32>
    %6 = arith.addf %3, %5 : vector<8x32xf32>
    %cst_5 = arith.constant 0.000000e+00 : f32
    %7 = vector.broadcast %cst_5 : f32 to vector<8x32xf32>
    %8 = arith.maximumf %6, %7 : vector<8x32xf32>
    %9 = arith.truncf %8 : vector<8x32xf32> to vector<8x32xbf16>
    %c0_6 = arith.constant 0 : index
    %c0_7 = arith.constant 0 : index
    %10 = vector.load %arg4[%c0_6, %c0_7] : memref<32x32xbf16, #tpu.memory_space<vmem>>, vector<32x32xbf16>
    %cst_8 = arith.constant dense<0.000000e+00> : vector<8x32xf32>
    %11 = tpu.matmul %9, %10, %cst_8 {dimension_numbers = #tpu.dot_dimension_numbers<[1], [0], [0], [1], [0, 0, 1, 1], [], []>} : vector<8x32xbf16>, vector<32x32xbf16>, vector<8x32xf32> -> vector<8x32xf32>
    %c0_9 = arith.constant 0 : index
    %c0_10 = arith.constant 0 : index
    %12 = vector.load %arg5[%c0_9, %c0_10] : memref<1x32xf32, #tpu.memory_space<vmem>>, vector<1x32xf32>
    %13 = vector.broadcast %12 : vector<1x32xf32> to vector<8x32xf32>
    %14 = arith.addf %11, %13 : vector<8x32xf32>
    %cst_11 = arith.constant 0.000000e+00 : f32
    %15 = vector.broadcast %cst_11 : f32 to vector<8x32xf32>
    %16 = arith.maximumf %14, %15 : vector<8x32xf32>
    %17 = arith.truncf %16 : vector<8x32xf32> to vector<8x32xbf16>
    %c0_12 = arith.constant 0 : index
    %c0_13 = arith.constant 0 : index
    %18 = vector.load %arg6[%c0_12, %c0_13] : memref<32x4xbf16, #tpu.memory_space<vmem>>, vector<32x4xbf16>
    %cst_14 = arith.constant dense<0.000000e+00> : vector<8x4xf32>
    %19 = tpu.matmul %17, %18, %cst_14 {dimension_numbers = #tpu.dot_dimension_numbers<[1], [0], [0], [1], [0, 0, 1, 1], [], []>} : vector<8x32xbf16>, vector<32x4xbf16>, vector<8x4xf32> -> vector<8x4xf32>
    %c0_15 = arith.constant 0 : index
    %c0_16 = arith.constant 0 : index
    %20 = vector.load %arg7[%c0_15, %c0_16] : memref<1x4xf32, #tpu.memory_space<vmem>>, vector<1x4xf32>
    %21 = vector.broadcast %20 : vector<1x4xf32> to vector<8x4xf32>
    %22 = arith.addf %19, %21 : vector<8x4xf32>
    %c0_17 = arith.constant 0 : index
    %c0_18 = arith.constant 0 : index
    %23 = vector.load %arg8[%c0_17, %c0_18] : memref<8x4xf32, #tpu.memory_space<vmem>>, vector<8x4xf32>
    tpu.vector_store %arg8[%c0_17, %c0_18], %22 {strides = array<i32>} : memref<8x4xf32, #tpu.memory_space<vmem>>, vector<8x4xf32>,
    return
  }
  func.func @transform_0(%arg0: i32) -> (i32, i32) {
    %c0_i32 = arith.constant 0 : i32
    %c0_i32_0 = arith.constant 0 : i32
    return %arg0, %c0_i32 : i32, i32
  }
  func.func @transform_1(%arg0: i32) -> (i32, i32) {
    %c0_i32 = arith.constant 0 : i32
    %c0_i32_0 = arith.constant 0 : i32
    %c0_i32_1 = arith.constant 0 : i32
    return %c0_i32, %c0_i32_0 : i32, i32
  }
  func.func @transform_2(%arg0: i32) -> (i32, i32) {
    %c0_i32 = arith.constant 0 : i32
    %c0_i32_0 = arith.constant 0 : i32
    %c0_i32_1 = arith.constant 0 : i32
    return %c0_i32, %c0_i32_0 : i32, i32
  }
  func.func @transform_3(%arg0: i32) -> (i32, i32) {
    %c0_i32 = arith.constant 0 : i32
    %c0_i32_0 = arith.constant 0 : i32
    %c0_i32_1 = arith.constant 0 : i32
    return %c0_i32, %c0_i32_0 : i32, i32
  }
  func.func @transform_4(%arg0: i32) -> (i32, i32) {
    %c0_i32 = arith.constant 0 : i32
    %c0_i32_0 = arith.constant 0 : i32
    %c0_i32_1 = arith.constant 0 : i32
    return %c0_i32, %c0_i32_0 : i32, i32
  }
  func.func @transform_5(%arg0: i32) -> (i32, i32) {
    %c0_i32 = arith.constant 0 : i32
    %c0_i32_0 = arith.constant 0 : i32
    %c0_i32_1 = arith.constant 0 : i32
    return %c0_i32, %c0_i32_0 : i32, i32
  }
  func.func @transform_6(%arg0: i32) -> (i32, i32) {
    %c0_i32 = arith.constant 0 : i32
    %c0_i32_0 = arith.constant 0 : i32
    %c0_i32_1 = arith.constant 0 : i32
    return %c0_i32, %c0_i32_0 : i32, i32
  }
  func.func @transform_7(%arg0: i32) -> (i32, i32) {
    %c0_i32 = arith.constant 0 : i32
    %c0_i32_0 = arith.constant 0 : i32
    return %arg0, %c0_i32 : i32, i32
  }
}

</mosaic_0001>

<bundles_post_ra>
// kernel: tpu_custom_call.1
= control target key start
LH: loop header
LB: loop body
LE: loop exit
PB: predicated region body
PF: predicated region fallthrough
CT: control target
= control target key end

     0   :  { %6 = vsyncpa [#allocation3], 0  ;;  %s103_s0 = inlined_call_operand.hbm [shape: f32[8,128], index: 0, kind: input, shape index: {}]   ;;  %s104_s1 = inlined_call_operand.hbm [shape: f32[8,128], index: 1, kind: output, shape index: {}]  }
   0x1   :  { %7 = vsyncpa [#allocation4], 0  ;;  %s85_s6 = smov [#allocation2]  }
   0x2   :  { %s14_s7 = sshll.u32 %s85_s6, 4  ;;  %s15_s7 = int_to_ptr.vmem [resolvable:$true] %s14_s7 }
   0x3   :  { %s49_s8 = scalar_lea.vmem %s15_s7, 128  ;;  %p54_p1 = scmp.lt.s32.totalorder %s15_s7, %s15_s7 }
   0x4   :  { %p50_p0 = scmp.ne.s32.totalorder %s15_s7, %s49_s8  ;;  %p55_p2 = scmp.lt.s32.totalorder %s49_s8, %s49_s8 }
   0x6   :  { %p56_p3 = por %p55_p2, %p54_p1 }
   0x8   :  { %p57_p4 = pnand %p56_p3, %p50_p0 }
   0xa   :  { %60 = shalt.err (!%p57_p4)
}
   0xb   :  { %17 = dma.hbm_to_vmem [thread:$0]  %s103_s0, 128, %s15_s7, [#allocation3]  }
   0xc   :  { %81 = dma.done.wait [#allocation3], 128  }
   0xd   :  { %82 = vsyncadd [#allocation3], 4294967168  ;;  %s86_s11 = smov [#allocation5]   ;;  %v21_v0 = vld [vmem:[#allocation2] sm:$0xff] }
   0xe   :  { %s30_s12 = sshll.u32 %s86_s11, 4  ;;  %v22_v1 = vadd.f32 1.0, %v21_v0  ;;  %s31_s12 = int_to_ptr.vmem [resolvable:$true] %s30_s12 }
   0xf   :  { %s61_s13 = scalar_lea.vmem %s31_s12, 128  ;;  %p66_p6 = scmp.lt.s32.totalorder %s31_s12, %s31_s12 }
  0x10   :  { %23 = vst [vmem:[#allocation5] sm:$0xff] %v22_v1  ;;  %p62_p5 = scmp.ne.s32.totalorder %s31_s12, %s61_s13  ;;  %p67_p7 = scmp.lt.s32.totalorder %s61_s13, %s61_s13 }
  0x12   :  { %p68_p8 = por %p67_p7, %p66_p6 }
  0x14   :  { %p69_p9 = pnand %p68_p8, %p62_p5 }
  0x16   :  { %72 = shalt.err (!%p69_p9)
}
  0x17   :  { %33 = dma.vmem_to_hbm [thread:$0]  %s31_s12, 128, %s104_s1, [#allocation4]  }
  0x18   :  { %83 = dma.done.wait [#allocation4], 128  }
  0x19   :  { %84 = vsyncadd [#allocation4], 4294967168 }
  0x1a   :  { %37 = vsyncpa [#allocation3], 1 }
  0x1b   :  { %38 = vsyncpa [#allocation4], 1 }

// kernel: _predictor_forward_impl.1
= control target key start
LH: loop header
LB: loop body
LE: loop exit
PB: predicated region body
PF: predicated region fallthrough
CT: control target
= control target key end

     0   :  { %v291_v0 = vmov 0.0   ;;  %vm292_vm0 = vmmov 0   ;;  %vm52_vm1 = vcmask 261120   ;;  %vm232_vm2 = vcmask 31744   ;;  %s369_s1 = inlined_call_operand.vmem [shape: bf16[32,32], index: 1, kind: input, shape index: {}]   ;;  %s370_s0 = inlined_call_operand.vmem [shape: f32[8,32], index: 0, kind: input, shape index: {}]   ;;  %s371_s3 = inlined_call_operand.vmem [shape: bf16[32,32], index: 3, kind: input, shape index: {}]   ;;  %s372_s5 = inlined_call_operand.vmem [shape: bf16[32,4], index: 5, kind: input, shape index: {}]   ;;  %s373_s2 = inlined_call_operand.vmem [shape: f32[1,32], index: 2, kind: input, shape index: {}]   ;;  %s374_s4 = inlined_call_operand.vmem [shape: f32[1,32], index: 4, kind: input, shape index: {}]   ;;  %s375_s6 = inlined_call_operand.vmem [shape: f32[1,4], index: 6, kind: input, shape index: {}]   ;;  %s376_s7 = inlined_call_operand.vmem [shape: f32[8,4], index: 7, kind: output, shape index: {}]  }
   0x1   :  { %259 = vmatprep.subr.bf16.mxu0 %v291_v0  ;;  %v285_v1 = vld [vmem:[%s369_s1 + $0x8] sm:$0xff]   ;;  %263 = vmatprep.mubr.msk.bf16.mxu0 %vm292_vm0, %v291_v0  ;;  %v286_v2 = vld [vmem:[%s369_s1] sm:$0xff]  }
   0x2   :  { %267 = vmatprep.subr.bf16.mxu1 %v291_v0  ;;  %271 = vmatprep.mubr.msk.bf16.mxu1 %vm292_vm0, %v291_v0  ;;  %v27_v3 = vld [vmem:[%s370_s0] sm:$0xff]  ;;  %v287_v5 = vld [vmem:[%s371_s3 + $0x8] sm:$0xff]  }
   0x3   :  { %260 = vmatpush3.bf16.msra.mxu0 %v285_v1  ;;  %v28_v4 = vpack.c.bf16 %v27_v3, %v27_v3  ;;  %268 = vmatpush3.bf16.msra.mxu1 %v287_v5  ;;  %v288_v6 = vld [vmem:[%s371_s3] sm:$0xff]   ;;  %v289_v7 = vld [vmem:[%s372_s5 + $0x8] sm:$0xff]  }
   0x4   :  { %261 = vmatprep.subr.bf16.mxu0 %v291_v0  ;;  %269 = vmatprep.subr.bf16.mxu1 %v291_v0  ;;  %v238_v8 = vld [vmem:[%s373_s2] ss:$0 sm:$0xff] }
   0x5   :  { %v290_v16 = vld [vmem:[%s372_s5] sm:$0xff]  }
   0x6   :  { %v242_v17 = vld [vmem:[%s374_s4] ss:$0 sm:$0xff] }
   0x7   :  { %262 = vmatpush3.bf16.msra.mxu0 %v286_v2  ;;  %270 = vmatpush3.bf16.msra.mxu1 %v288_v6  ;;  %v246_v25 = vld [vmem:[%s375_s6] ss:$0 sm:$0xff] }
   0x8   :  { %275 = vmatprep.subr.bf16.mxu0 %v291_v0 }
   0xa   :  { %264 = vmatmul.mubr.msk.bf16.vlgmr.msra.gmra.mxu0 %vm52_vm1, %v28_v4 }
   0xb   :  { %279 = vmatprep.mubr.msk.bf16.mxu0 %vm292_vm0, %v291_v0  ;;  %276 = vmatpush3.bf16.msra.mxu0 %v289_v7 }
   0xc   :  { %277 = vmatprep.subr.bf16.mxu0 %v291_v0 }
   0xf   :  { %278 = vmatpush3.bf16.msra.mxu0 %v290_v16 }
  0xca   :  { %v90_v9 = vpop.f32.mrf.mxu0 }
  0xcb   :  { %v91_v10 = vadd.f32 %v238_v8, %v90_v9 }
  0xcc   :  { %v265_v11 = vpop.f32.mrf.mxu0 }
  0xcd   :  { %v96_v12 = vmax.f32 %v91_v10, 0.0 }
  0xce   :  { %v93_v13 = vpop.f32.mrf.mxu0 }
  0xcf   :  { %v97_v14 = vpack.c.bf16 %v96_v12, %v96_v12 }
  0xd0   :  { %v266_v15 = vpop.f32.mrf.mxu0 }
  0xd1   :  { %272 = vmatmul.mubr.msk.bf16.vlgmr.msra.gmra.mxu1 %vm52_vm1, %v97_v14 }
 0x191   :  { %v158_v18 = vpop.f32.mrf.mxu1 }
 0x192   :  { %v159_v19 = vadd.f32 %v242_v17, %v158_v18 }
 0x193   :  { %v273_v20 = vpop.f32.mrf.mxu1 }
 0x194   :  { %v164_v21 = vmax.f32 %v159_v19, 0.0 }
 0x195   :  { %v161_v22 = vpop.f32.mrf.mxu1 }
 0x196   :  { %v165_v23 = vpack.c.bf16 %v164_v21, %v164_v21 }
 0x197   :  { %v274_v24 = vpop.f32.mrf.mxu1 }
 0x198   :  { %280 = vmatmul.mubr.msk.bf16.vlgmr.msra.gmra.mxu0 %vm52_vm1, %v165_v23 }
 0x258   :  { %v226_v26 = vpop.f32.mrf.mxu0 }
 0x259   :  { %v227_v27 = vadd.f32 %v246_v25, %v226_v26 }
 0x25a   :  { %v281_v28 = vpop.f32.mrf.mxu0 }
 0x25b   :  { %233 = vst.msk [vmem:[%s376_s7] sm:$0xff] %vm232_vm2, %v227_v27 }
 0x25c   :  { %v229_v29 = vpop.f32.mrf.mxu0 }
 0x25e   :  { %v282_v30 = vpop.f32.mrf.mxu0 }

</bundles_post_ra>
